<compile_context>
chip_gen: v7x
topology: tpu7x:2x2x1
jax: 0.10.0
libtpu: 0.0.40
codegen_flags: <defaults>
</compile_context>

<pallas_src>
import functools
from math import sqrt

import numpy as np
import jax
import jax.numpy as jnp
from jax import lax
from jax.experimental import pallas as pl
from jax.experimental.pallas import tpu as pltpu


# --------------------------------------------------------------------------------------
# Generation-aware VMEM budget / tile helpers
# --------------------------------------------------------------------------------------

def _vmem_budget_bytes():
    """Scoped-VMEM budget with headroom below physical capacity.

    v5e/v6e: 128 MiB physical -> ~96 MiB budget; v7x: 64 MiB physical -> ~48 MiB.
    Falls back to the conservative v7x figure if the query is unavailable.
    """
    cap = None
    try:
        cap = getattr(pltpu.get_tpu_info(), "vmem_capacity_bytes", None)
    except Exception:
        cap = None
    if not cap:
        cap = 64 << 20
    return int(min(cap * 3 // 4, 100 << 20))


def _default_tile(length, preferred):
    """Largest tile <= preferred that evenly divides `length`, preferring multiples of
    128 (lane/MXU friendly); falls back to the full length for short axes."""
    if length <= preferred:
        return length
    fallback = None
    for t in range(preferred, 127, -1):
        if length % t == 0:
            if t % 128 == 0:
                return t
            if fallback is None and t % 8 == 0:
                fallback = t
    return fallback if fallback is not None else length


# --------------------------------------------------------------------------------------
# Stage 1: fused linear projection  y = (x @ W + b) * out_scale   (tiled Pallas matmul)
# --------------------------------------------------------------------------------------

def _linear_kernel(x_ref, w_ref, b_ref, o_ref, *, out_scale):
    y = jnp.dot(x_ref[...], w_ref[...], preferred_element_type=jnp.float32)
    y = y + b_ref[...]
    if out_scale != 1.0:
        y = y * out_scale
    o_ref[...] = y.astype(o_ref.dtype)


def _linear(x, w, b, *, out_dtype, out_scale=1.0, row_block=512):
    """x: (bs, L, d), w: (d, hid), b: (1, hid) -> (bs, L, hid) in out_dtype.

    d and hid are kept whole per grid step (typical embedding dims fit VMEM easily);
    token rows are tiled.  Scale folding (out_scale) lets the caller bake the module's
    1/scale into the Q projection so the attention logits need no further scaling.
    """
    bs, L, d = x.shape
    hid = w.shape[1]
    tl = _default_tile(L, row_block)
    assert L % tl == 0
    return pl.pallas_call(
        functools.partial(_linear_kernel, out_scale=float(out_scale)),
        out_shape=jax.ShapeDtypeStruct((bs, L, hid), out_dtype),
        grid=(bs, L // tl),
        in_specs=[
            pl.BlockSpec((None, tl, d), lambda bi, i: (bi, i, 0)),
            pl.BlockSpec((d, hid), lambda bi, i: (0, 0)),
            pl.BlockSpec((1, hid), lambda bi, i: (0, 0)),
        ],
        out_specs=pl.BlockSpec((None, tl, hid), lambda bi, i: (bi, i, 0)),
        compiler_params=pltpu.CompilerParams(
            dimension_semantics=("parallel", "parallel"),
            vmem_limit_bytes=_vmem_budget_bytes()),
    )(x, w, b)


# --------------------------------------------------------------------------------------
# Stage 2: flash attention + fused output projection
# --------------------------------------------------------------------------------------

def _flash_mha_kernel(q_ref, k_ref, v_ref, wo_ref, bo_ref, out_ref,
                      m_scr, l_scr, acc_scr, out_acc, *, compute_dtype):
    """Grid = (batch, q_tiles, heads, kv_tiles). One head / one kv tile per step.

    q_ref/k_ref/v_ref are per-head slices of the already-projected tensors (Q already
    carries the module's 1/scale factor), so the inner loop is just two MXU matmuls
    plus the online-softmax update.
    """
    h = pl.program_id(2)
    kv = pl.program_id(3)
    n_h = pl.num_programs(2)
    n_kv = pl.num_programs(3)

    @pl.when(jnp.logical_and(h == 0, kv == 0))
    def _():
        # Fresh (batch, q_tile): start the cross-head output accumulator at the fc_o
        # bias (folded here so the final-store epilogue is just a cast).
        out_acc[...] = jnp.broadcast_to(bo_ref[...].astype(jnp.float32), out_acc.shape)

    @pl.when(kv == 0)
    def _():
        m_scr[...] = jnp.full_like(m_scr, -jnp.inf)
        l_scr[...] = jnp.zeros_like(l_scr)
        acc_scr[...] = jnp.zeros_like(acc_scr)

    # Logits: contract over head_dim directly (no transposed copy of K).
    s = lax.dot_general(q_ref[...], k_ref[...],
                        dimension_numbers=(((1,), (1,)), ((), ())),
                        preferred_element_type=jnp.float32)            # (tq, tk)

    # Online (flash-style) softmax, unnormalized; stats stay f32.
    m_prev = m_scr[...]
    m_new = jnp.maximum(m_prev, jnp.max(s, axis=-1, keepdims=True))
    alpha = jnp.exp(m_prev - m_new)
    p = jnp.exp(s - m_new)
    l_scr[...] = alpha * l_scr[...] + jnp.sum(p, axis=-1, keepdims=True)
    acc_scr[...] = alpha * acc_scr[...] + jnp.dot(
        p.astype(compute_dtype), v_ref[...], preferred_element_type=jnp.float32)
    m_scr[...] = m_new

    @pl.when(kv == n_kv - 1)
    def _():
        # Deferred normalization on the small (tq, head_dim) context (EUP reciprocal),
        # then fold this head's rows of fc_o into the lane-dense output accumulator.
        ctx = acc_scr[...] * pl.reciprocal(l_scr[...], approx=True)
        out_acc[...] += jnp.dot(ctx.astype(compute_dtype), wo_ref[...],
                                preferred_element_type=jnp.float32)

    @pl.when(jnp.logical_and(h == n_h - 1, kv == n_kv - 1))
    def _():
        out_ref[...] = out_acc[...].astype(out_ref.dtype)


def mha_forward(query, key, value, params, *, n_heads, head_dim,
                q_block=None, kv_block=None, compute_dtype=jnp.float32):
    bs, lq, dq = query.shape
    _, lk, dk = key.shape
    hid = n_heads * head_dim
    wq, bq, wk, bk, wv, bv, wo, bo = params

    # Module semantics: scale = rsqrt(hid_dim) in fp32; energy = (q @ k^T) / scale.
    scale = np.float32(1.0) / np.sqrt(np.float32(hid))
    inv_scale = float(np.float32(1.0) / scale)

    # ---- Stage 1: projections, hoisted out of the attention grid (done once per token).
    # Scale is folded into Q here; outputs are stored in compute_dtype so the attention
    # kernel needs no per-step operand casts and bf16 halves the operand HBM traffic.
    q_proj = _linear(query, wq, bq, out_dtype=compute_dtype, out_scale=inv_scale)
    k_proj = _linear(key, wk, bk, out_dtype=compute_dtype)
    v_proj = _linear(value, wv, bv, out_dtype=compute_dtype)
    wo_c = wo.astype(compute_dtype)

    # ---- Stage 2: tile selection (>=128, multiples of 128, VMEM-budget aware).
    tq = q_block if q_block is not None else _default_tile(lq, 256)
    tk = kv_block if kv_block is not None else _default_tile(lk, 512)
    assert lq % tq == 0 and lk % tk == 0, "tiles must divide the sequence lengths"

    budget = _vmem_budget_bytes()
    cdt_size = jnp.dtype(compute_dtype).itemsize
    out_size = jnp.dtype(query.dtype).itemsize

    def attn_vmem(tq_, tk_):
        dbl_in = 2 * cdt_size * (tq_ * head_dim + 2 * tk_ * head_dim + head_dim * hid) \
                 + 2 * 4 * hid
        dbl_out = 2 * out_size * tq_ * hid
        scratch = 4 * (2 * tq_ + tq_ * head_dim + tq_ * hid)
        return dbl_in + dbl_out + scratch

    while attn_vmem(tq, tk) > budget:
        if tk >= 256 and tk % 2 == 0 and lk % (tk // 2) == 0:
            tk //= 2
        elif tq >= 256 and tq % 2 == 0 and lq % (tq // 2) == 0:
            tq //= 2
        else:
            break

    grid = (bs, lq // tq, n_heads, lk // tk)
    kernel = functools.partial(_flash_mha_kernel, compute_dtype=compute_dtype)

    # Advisory cost estimate (includes the flash K/V re-read per q-tile).
    flops = int(4 * bs * lq * lk * hid + 2 * bs * lq * hid * hid)
    transcendentals = int(bs * n_heads * lq * lk)
    bytes_accessed = int(
        cdt_size * (bs * lq * hid                              # q_proj read once
                    + 2 * bs * (lq // tq) * lk * hid           # k/v re-read per q tile
                    + bs * (lq // tq) * hid * hid)             # wo re-read per (b, q tile)
        + out_size * bs * lq * hid)                            # output write

    return pl.pallas_call(
        kernel,
        out_shape=jax.ShapeDtypeStruct((bs, lq, hid), query.dtype),
        grid=grid,
        in_specs=[
            # Per-head column slices of the projected tensors (no transposes needed).
            pl.BlockSpec((None, tq, head_dim), lambda b, qi, h, kv: (b, qi, h)),   # Q
            pl.BlockSpec((None, tk, head_dim), lambda b, qi, h, kv: (b, kv, h)),   # K
            pl.BlockSpec((None, tk, head_dim), lambda b, qi, h, kv: (b, kv, h)),   # V
            pl.BlockSpec((head_dim, hid), lambda b, qi, h, kv: (h, 0)),            # wo rows
            pl.BlockSpec((1, hid), lambda b, qi, h, kv: (0, 0)),                   # bo
        ],
        out_specs=pl.BlockSpec((None, tq, hid), lambda b, qi, h, kv: (b, qi, 0)),
        scratch_shapes=[
            pltpu.VMEM((tq, 1), jnp.float32),          # running max
            pltpu.VMEM((tq, 1), jnp.float32),          # running denom
            pltpu.VMEM((tq, head_dim), jnp.float32),   # unnormalized context
            pltpu.VMEM((tq, hid), jnp.float32),        # bo + sum_h ctx_h @ wo_h
        ],
        compiler_params=pltpu.CompilerParams(
            dimension_semantics=("parallel", "parallel", "arbitrary", "arbitrary"),
            vmem_limit_bytes=budget),
        cost_estimate=pl.CostEstimate(flops=flops, transcendentals=transcendentals,
                                      bytes_accessed=bytes_accessed),
    )(q_proj, k_proj, v_proj, wo_c, bo)


# ----------------- deterministic parameter init (mirrors __init__) -----------------

def xavier_uniform(key, out_dim, in_dim, gain=1.0):
    # torch nn.init.xavier_uniform_ on a Linear weight of shape (out, in)
    bound = gain * np.sqrt(6.0 / (in_dim + out_dim))
    return jax.random.uniform(key, (out_dim, in_dim), jnp.float32, -bound, bound)


def make_params(key, q_emb_dim, kv_emb_dim, n_heads, head_dim):
    hid = n_heads * head_dim
    ks = jax.random.split(key, 5)
    g = 1.0 / sqrt(2.0)
    wq_t = xavier_uniform(ks[0], hid, q_emb_dim, gain=g)     # (out, in)
    wk_t = xavier_uniform(ks[1], hid, kv_emb_dim, gain=g)
    wv_t = xavier_uniform(ks[2], hid, kv_emb_dim, gain=g)
    wo_t = xavier_uniform(ks[3], hid, hid, gain=1.0)
    # fc_q bias keeps the default nn.Linear init (not reset in _reset_parameters)
    bq_bound = 1.0 / sqrt(q_emb_dim)
    bq = jax.random.uniform(ks[4], (1, hid), jnp.float32, -bq_bound, bq_bound)
    bk = jnp.zeros((1, hid), jnp.float32)
    bv = jnp.zeros((1, hid), jnp.float32)
    bo = jnp.zeros((1, hid), jnp.float32)
    # pre-transpose weights to (in, out) for x @ W in the kernels
    return (wq_t.T, bq, wk_t.T, bk, wv_t.T, bv, wo_t.T, bo)


# ----------------- plain-JAX reference (mirrors the torch forward) -----------------

def mha_reference(query, key, value, params, *, n_heads, head_dim,
                  compute_dtype=jnp.float32):
    """Faithful reference; for compute_dtype=bf16 it mirrors the kernel's operand casts
    (projections / attention weights / wo cast to bf16, f32 accumulation & softmax)."""
    wq, bq, wk, bk, wv, bv, wo, bo = params
    hid = n_heads * head_dim
    scale = np.float32(1.0) / np.sqrt(np.float32(hid))
    with jax.default_matmul_precision("highest"):
        q = query @ wq + bq[0]
        k = key @ wk + bk[0]
        v = value @ wv + bv[0]
        bs, lq, _ = q.shape
        lk = k.shape[1]
        qh = q.reshape(bs, lq, n_heads, head_dim).transpose(0, 2, 1, 3).astype(compute_dtype)
        kh = k.reshape(bs, lk, n_heads, head_dim).transpose(0, 2, 1, 3).astype(compute_dtype)
        vh = v.reshape(bs, lk, n_heads, head_dim).transpose(0, 2, 1, 3).astype(compute_dtype)
        energy = jnp.einsum("bhqd,bhkd->bhqk", qh, kh,
                            preferred_element_type=jnp.float32) / scale
        attn = jax.nn.softmax(energy, axis=-1)
        x = jnp.einsum("bhqk,bhkd->bhqd", attn.astype(compute_dtype), vh,
                       preferred_element_type=jnp.float32)
        x = x.transpose(0, 2, 1, 3).reshape(bs, lq, hid)
        out = jnp.dot(x.astype(compute_dtype), wo.astype(compute_dtype),
                      preferred_element_type=jnp.float32) + bo[0]
    return out


if __name__ == "__main__":
    # Shapes chosen so every block is lane-dense (multiples of 128 on the minor dims)
    # while total work stays small.  head_dim=128 -> hid_dim=256.
    bs = 2
    lq, lk = 256, 384
    q_emb_dim, kv_emb_dim = 128, 64
    n_heads, head_dim = 2, 128

    root = jax.random.PRNGKey(0)
    k_q, k_k, k_v, k_p = jax.random.split(root, 4)
    # Moderate input magnitudes: the module's energy = qk^T / rsqrt(hid) scaling is very
    # sharp for unit-variance activations; 0.25x keeps the softmax non-degenerate so the
    # numeric comparison is meaningful across the whole distribution.
    query = 0.25 * jax.random.normal(k_q, (bs, lq, q_emb_dim), jnp.float32)
    key = 0.25 * jax.random.normal(k_k, (bs, lk, kv_emb_dim), jnp.float32)
    value = 0.25 * jax.random.normal(k_v, (bs, lk, kv_emb_dim), jnp.float32)

    params = make_params(k_p, q_emb_dim, kv_emb_dim, n_heads, head_dim)

    # f32 path with explicit 128x128 tiles: exercises q-tiling and the online-softmax
    # kv loop (2 q-tiles x 3 kv-tiles per head).
    ref = mha_reference(query, key, value, params, n_heads=n_heads, head_dim=head_dim)
    out = mha_forward(query, key, value, params, n_heads=n_heads, head_dim=head_dim,
                      q_block=128, kv_block=128, compute_dtype=jnp.float32)
    out = jax.block_until_ready(out)
    assert out.shape == (bs, lq, n_heads * head_dim)
    np.testing.assert_allclose(np.asarray(out), np.asarray(ref), rtol=2e-2, atol=2e-2)

    # bf16 MXU operands (f32 softmax stats / accumulation), default tile selection.
    # Compared against the bf16-mirrored reference with a robust aggregate metric
    # (elementwise checks are brittle when sharp logits sit near decision boundaries).
    ref_bf16 = mha_reference(query, key, value, params, n_heads=n_heads,
                             head_dim=head_dim, compute_dtype=jnp.bfloat16)
    out_bf16 = mha_forward(query, key, value, params, n_heads=n_heads, head_dim=head_dim,
                           compute_dtype=jnp.bfloat16)
    out_bf16 = jax.block_until_ready(out_bf16)
    assert bool(jnp.all(jnp.isfinite(out_bf16)))
    assert float(jnp.mean(jnp.abs(out_bf16 - ref_bf16))) < 5e-2

    print("KERNEL_OK")
</pallas_src>

<mosaic_0001>
module attributes {stable_mosaic.version = 11 : i64} {
  func.func @_linear_kernel(%arg0: i32, %arg1: i32, %arg2: memref<1x256x128xf32, #tpu.memory_space<vmem>>, %arg3: memref<128x256xf32, #tpu.memory_space<vmem>>, %arg4: memref<1x256xf32, #tpu.memory_space<vmem>>, %arg5: memref<1x256x256xf32, #tpu.memory_space<vmem>>) attributes {dimension_semantics = [#tpu.dimension_semantics<parallel>, #tpu.dimension_semantics<parallel>], iteration_bounds = array<i64: 2, 1>, scalar_prefetch = 0 : i64, scratch_operands = 0 : i64, tpu.core_type = #tpu.core_type<tc>, window_params = [{transform_indices = @transform_0, window_bounds = array<i64: 1, 256, 128>}, {pipeline_mode = #tpu.pipeline_mode<synchronous>, transform_indices = @transform_1, window_bounds = array<i64: 128, 256>}, {pipeline_mode = #tpu.pipeline_mode<synchronous>, transform_indices = @transform_2, window_bounds = array<i64: 1, 256>}, {transform_indices = @transform_3, window_bounds = array<i64: 1, 256, 256>}]} {
    %c0 = arith.constant 0 : index
    %c0_0 = arith.constant 0 : index
    %c0_1 = arith.constant 0 : index
    %0 = vector.load %arg2[%c0, %c0_0, %c0_1] : memref<1x256x128xf32, #tpu.memory_space<vmem>>, vector<1x256x128xf32>
    %1 = vector.shape_cast %0 : vector<1x256x128xf32> to vector<256x128xf32>
    %c0_2 = arith.constant 0 : index
    %c0_3 = arith.constant 0 : index
    %2 = vector.load %arg3[%c0_2, %c0_3] : memref<128x256xf32, #tpu.memory_space<vmem>>, vector<128x256xf32>
    %cst = arith.constant dense<0.000000e+00> : vector<256x256xf32>
    %3 = tpu.matmul %1, %2, %cst {dimension_numbers = #tpu.dot_dimension_numbers<[1], [0], [0], [1], [0, 0, 1, 1], [], []>} : vector<256x128xf32>, vector<128x256xf32>, vector<256x256xf32> -> vector<256x256xf32>
    %c0_4 = arith.constant 0 : index
    %c0_5 = arith.constant 0 : index
    %4 = vector.load %arg4[%c0_4, %c0_5] : memref<1x256xf32, #tpu.memory_space<vmem>>, vector<1x256xf32>
    %5 = vector.broadcast %4 : vector<1x256xf32> to vector<256x256xf32>
    %6 = arith.addf %3, %5 : vector<256x256xf32>
    %cst_6 = arith.constant 1.600000e+01 : f32
    %7 = vector.broadcast %cst_6 : f32 to vector<256x256xf32>
    %8 = arith.mulf %6, %7 : vector<256x256xf32>
    %c0_7 = arith.constant 0 : index
    %c0_8 = arith.constant 0 : index
    %c0_9 = arith.constant 0 : index
    %9 = vector.load %arg5[%c0_7, %c0_8, %c0_9] : memref<1x256x256xf32, #tpu.memory_space<vmem>>, vector<1x256x256xf32>
    %10 = vector.shape_cast %9 : vector<1x256x256xf32> to vector<256x256xf32>
    %11 = vector.shape_cast %8 : vector<256x256xf32> to vector<1x256x256xf32>
    tpu.vector_store %arg5[%c0_7, %c0_8, %c0_9], %11 {strides = array<i32>} : memref<1x256x256xf32, #tpu.memory_space<vmem>>, vector<1x256x256xf32>,
    return
  }
  func.func @transform_0(%arg0: i32, %arg1: i32) -> (i32, i32, i32) {
    %c0_i32 = arith.constant 0 : i32
    %c0_i32_0 = arith.constant 0 : i32
    return %arg0, %arg1, %c0_i32 : i32, i32, i32
  }
  func.func @transform_1(%arg0: i32, %arg1: i32) -> (i32, i32) {
    %c0_i32 = arith.constant 0 : i32
    %c0_i32_0 = arith.constant 0 : i32
    %c0_i32_1 = arith.constant 0 : i32
    return %c0_i32, %c0_i32_0 : i32, i32
  }
  func.func @transform_2(%arg0: i32, %arg1: i32) -> (i32, i32) {
    %c0_i32 = arith.constant 0 : i32
    %c0_i32_0 = arith.constant 0 : i32
    %c0_i32_1 = arith.constant 0 : i32
    return %c0_i32, %c0_i32_0 : i32, i32
  }
  func.func @transform_3(%arg0: i32, %arg1: i32) -> (i32, i32, i32) {
    %c0_i32 = arith.constant 0 : i32
    %c0_i32_0 = arith.constant 0 : i32
    return %arg0, %arg1, %c0_i32 : i32, i32, i32
  }
}

</mosaic_0001>

<bundles_post_ra>
// kernel: tpu_custom_call.1
= control target key start
LH: loop header
LB: loop body
LE: loop exit
PB: predicated region body
PF: predicated region fallthrough
CT: control target
= control target key end

     0   :  { %8 = vsyncpa [#allocation3], 0  ;;  %s1546_s0 = inlined_call_operand.hbm [shape: f32[2,256,128], index: 0, kind: input, shape index: {}]   ;;  %s1547_s1 = inlined_call_operand.hbm [shape: f32[128,256], index: 1, kind: input, shape index: {}]   ;;  %s1548_s2 = inlined_call_operand.vmem [shape: f32[1,256], index: 2, kind: input, shape index: {}]   ;;  %s1549_s3 = inlined_call_operand.hbm [shape: f32[2,256,256], index: 3, kind: output, shape index: {}]  }
   0x1   :  { %10 = vsyncpa [#allocation3 + $0x1], 0 }
   0x2   :  { %11 = vsyncpa [#allocation6], 0 }
   0x3   :  { %12 = vsyncpa [#allocation4], 0 }
   0x4   :  { %14 = vsyncpa [#allocation4 + $0x1], 0  ;;  %s1122_s12 = smov 0   ;;  %s1124_s13 = smov 0  }
   0x5   :  { %s1126_s14 = smov 0   ;;  %s1128_s15 = smov 0  }
   0x6   :  { %s1130_s16 = smov 0   ;;  %s1132_s17 = smov 0  }
   0x7 LB: > { %s799_s18 = sadd.s32 4294967295, %s1090_s17   ;;  %s800_s19 = sadd.s32 4294967294, %s1090_s17   ;;  %s1090_s17 = sphi %s1132_s17, %s20_s17   ;;  %s1086_s16 = sphi %s1130_s16, %s1573_s16   ;;  %s1082_s15 = sphi %s1128_s15, %s1572_s15   ;;  %s1078_s14 = sphi %s1126_s14, %s1571_s14   ;;  %s1074_s13 = sphi %s1124_s13, %s1570_s13   ;;  %s1070_s12 = sphi %s1122_s12, %s1569_s12  }
   0x8   : > { %p54_p0 = scmp.ne.s32.totalorder %s1074_s13, %s1070_s12  ;;  %p1156_p1 = scmp.eq.s32.totalorder %s799_s18, 0 }
   0x9   : > { %p1160_p2 = scmp.eq.s32.totalorder %s799_s18, 1  ;;  %p128_p3 = scmp.eq.s32.totalorder %s800_s19, 1 }
   0xa   : > { %s1554_s20 = scalar_select %p1156_p1, 1, 0 }
   0xb   : > { %s1555_s21 = scalar_select %p1160_p2, 1, 0 }
   0xc   : > { %p1166_p4 = por %p1156_p1, %p54_p0  ;;  %p801_p5 = scmp.ge.s32.totalorder %s1090_s17, 1 }
   0xd   : > { %p1171_p6 = por %p128_p3, %p54_p0  ;;  %p135_p7 = scmp.lt.s32.totalorder %s1090_s17, 3 }
   0xe   : > { %s1556_s22 = scalar_select %p1166_p4, 1, 0 }
   0xf   : > { %s1557_s23 = scalar_select %p1171_p6, 1, 0 }
  0x10   : > { %p1176_p8 = pnand %p801_p5, %p135_p7  ;;  %s1092_s25 = smov [#allocation5]  }
  0x11   : > { %s147_s26 = sshll.u32 %s1092_s25, 4  ;;  %s32_s28 = sadd.s32 1, %s1086_s16  ;;  %s148_s26 = int_to_ptr.vmem [resolvable:$true] %s147_s26 }
  0x12   : > { %s1558_s24 = scalar_select %p1176_p8, 1, 0 }
  0x13   : > { %p874_p9 = pneg %p1176_p8  ;;  %s946_s4 = scalar_lea.hbm %s1547_s1, 4096 }
  0x14   : > { %p947_p12 = scmp.ne.s32.totalorder %s1547_s1, %s946_s4  ;;  %p953_p5 = scmp.lt.u32.totalorder %s946_s4, %s1547_s1 }
  0x15   : > { %p1185_p11 = pnand %p874_p9, %p1156_p1 }
  0x17   : > { %p948_p13 = pneg %p1185_p11 }
  0x19   : > { %p949_p0 = pnand %p948_p13, %p947_p12 }
  0x1b   : > { %p950_p3 = pneg %p949_p0 }
  0x1d   : > { %p955_p7 = pnand %p953_p5, %p950_p3 }
  0x1f   : > { %958 = shalt.err (!%p955_p7)
}
  0x20   : > { %s959_s9 = scalar_lea.vmem %s148_s26, 4096  ;;  %p967_p1 = scmp.lt.s32.totalorder %s148_s26, %s148_s26 }
  0x21   : > { %p960_p9 = scmp.ne.s32.totalorder %s148_s26, %s959_s9  ;;  %p968_p4 = scmp.lt.s32.totalorder %s959_s9, %s959_s9 }
  0x23   : > { %p962_p10 = pnand %p960_p9, %p948_p13  ;;  %p969_p8 = por %p968_p4, %p967_p1 }
  0x25   : > { %p963_p6 = pneg %p962_p10 }
  0x27   : > { %p970_p2 = pnand %p969_p8, %p963_p6 }
  0x29   : > { %973 = shalt.err (!%p970_p2)
}
  0x2a   : > { %s1093_s10 = smov 256   ;;  %s1094_s11 = smov 16  }
  0x2b   : > { %877 = dma.hbm_to_vmem [thread:$0]  (!%p1185_p11), %s1547_s1, 4096, %s148_s26, [#allocation6], %s1093_s10, %s1093_s10, %s1094_s11  }
  0x2c   : > { %p34_p1 = scmp.ge.s32.totalorder %s32_s28, 2  ;;  %s41_s25 = sadd.s32 1, %s1078_s14 }
  0x2d   : > { %p48_p2 = scmp.ne.s32.totalorder %s1078_s14, %s1074_s13  ;;  %p49_p4 = scmp.eq.s32.totalorder %s1090_s17, 0 }
  0x2e   : > { %s1575_s28 = smov (%p34_p1, %s32_s28), 0  ;;  %p1561_p8 = scmp.ne.s32.totalorder %s1555_s21, 0 }
  0x2f   : > { %p1212_p6 = por %p49_p4, %p48_p2  ;;  %s36_s27 = ssub.s32 %s1086_s16, %s1575_s28 }
  0x30   : > { %p1218_p10 = por %p1561_p8, %p48_p2  ;;  %p887_p12 = scmp.lt.s32.totalorder %s1090_s17, 2 }
  0x31   : > { %p39_p11 = scmp.eq.s32.totalorder %s36_s27, 0  ;;  %s164_s26 = sand.u32 1, %s1078_s14  }
  0x32   : > { %s804_s4 = sshll.u32 %s164_s26, 8  ;;  %s816_s6 = sshll.u32 %s1086_s16, 12 }
  0x33   : > { %s1227_s5 = scalar_select %p39_p11, %s1078_s14, %s41_s25  }
  0x34   : > { %s1233_s9 = scalar_lea.hbm %s1546_s0, %s816_s6  ;;  %s168_s21 = scalar_lea.vmem [#allocation2], %s804_s4 }
  0x35   : > { %s177_s10 = sshll.u32 %s168_s21, 4  ;;  %p1239_p13 = pnand %p887_p12, %p1212_p6  ;;  %s1235_s10 = int_to_ptr.vmem [resolvable:$true] %s177_s10 }
  0x36   : > { %s1243_s18 = scalar_lea.sflag [#allocation3], %s164_s26  ;;  %s974_s19 = scalar_lea.hbm %s1233_s9, 4096 }
  0x37   : > { %p975_p0 = scmp.ne.s32.totalorder %s1233_s9, %s974_s19  ;;  %p976_p3 = pneg %p1239_p13 }
  0x38   : > { %s979_s29 = scalar_lea.hbm %s1546_s0, 8192  ;;  %p980_p9 = scmp.lt.u32.totalorder %s1233_s9, %s1546_s0 }
  0x39   : > { %p977_p5 = pnand %p976_p3, %p975_p0  ;;  %p981_p1 = scmp.lt.u32.totalorder %s979_s29, %s974_s19 }
  0x3a   : > { %p983_p4 = scmp.lt.u32.totalorder %s974_s19, %s1233_s9 }
  0x3b   : > { %p978_p7 = pneg %p977_p5  ;;  %p982_p2 = por %p981_p1, %p980_p9 }
  0x3d   : > { %p984_p6 = por %p983_p4, %p982_p2 }
  0x3f   : > { %p985_p8 = pnand %p984_p6, %p978_p7 }
  0x41   : > { %988 = shalt.err (!%p985_p8)
}
  0x42   : > { %s989_s26 = scalar_lea.vmem %s1235_s10, 4096  ;;  %s1095_s7 = smov [#allocation2]  }
  0x43   : > { %p990_p12 = scmp.ne.s32.totalorder %s1235_s10, %s989_s26  ;;  %s994_s8 = sshll.u32 %s1095_s7, 4  ;;  %s995_s8 = int_to_ptr.vmem [resolvable:$false] %s994_s8 }
  0x44   : > { %s996_s21 = scalar_lea.vmem %s995_s8, 8192  ;;  %p997_p5 = scmp.lt.s32.totalorder %s1235_s10, %s995_s8 }
  0x45   : > { %p992_p11 = pnand %p990_p12, %p976_p3  ;;  %p998_p9 = scmp.lt.s32.totalorder %s996_s21, %s989_s26 }
  0x47   : > { %p993_p0 = pneg %p992_p11  ;;  %p999_p1 = por %p998_p9, %p997_p5 }
  0x49   : > { %p1000_p2 = pnand %p999_p1, %p993_p0 }
  0x4b   : > { %1003 = shalt.err (!%p1000_p2)
}
  0x4c   : > { %s1096_s19 = smov 128   ;;  %s1097_s25 = smov 8  }
  0x4d   : > { %881 = dma.hbm_to_vmem [thread:$0]  (!%p1239_p13), %s1233_s9, 4096, %s1235_s10, %s1243_s18, %s1096_s19, %s1096_s19, %s1097_s25  }
  0x4e   : > { %p1564_p3 = scmp.ne.s32.totalorder %s1558_s24, 0 }
  0x4f   : > { %s1274_s27 = sand.u32 (!%p1564_p3), 1, %s1074_s13   ;;  %p1565_p7 = scmp.ne.s32.totalorder (!%p1564_p3), %s1556_s22, 0 }
  0x50   : > { %189 = sbr.rel (%p1564_p3) target bundleno = 418 (0x1a2), region = 32  ;;  %s808_s29 = sshll.u32 (!%p1564_p3), %s1274_s27, 8 }
  0x51   : > { %s192_s4 = scalar_lea.sflag (!%p1564_p3), [#allocation3], %s1274_s27  ;;  %s1278_s6 = scalar_lea.vmem (!%p1564_p3), [#allocation2], %s808_s29 }
  0x57   : > { %1057 = dma.done.wait (%p1565_p7), %s192_s4, 4096  }
  0x58   : > { %1059 = vsyncadd (%p1565_p7), %s192_s4, 4294963200  ;;  %p1566_p13 = scmp.ne.s32.totalorder %s1554_s20, 0 }
  0x5a   : > { %1061 = dma.done.wait (%p1566_p13), [#allocation6], 4096  }
  0x5b   : > { %1063 = vsyncadd (%p1566_p13), [#allocation6], 4294963200  ;;  %v1098_v0 = vmov 0.0   ;;  %v257_v1 = vld [vmem:[#allocation5 + $0x8] sm:$0xff]  ;;  %v259_v2 = vld [vmem:[#allocation5 + $0x18] sm:$0xff]  ;;  %s810_s24 = sshll.u32 %s1274_s27, 9 }
  0x5c   : > { %364 = vmatprep.mubr.f32.mxu0 %v1098_v0  ;;  %460 = vmatprep.mubr.f32.mxu1 %v1098_v0  ;;  %v256_v3 = vld [vmem:[#allocation5] sm:$0xff]  ;;  %v818_v4 = vpack.c.bf16 %v259_v2, %v257_v1  ;;  %v258_v5 = vld [vmem:[#allocation5 + $0x10] sm:$0xff]  ;;  %v261_v6 = vld [vmem:[#allocation5 + $0x28] sm:$0xff]  ;;  %s1364_s9 = scalar_lea.vmem [#allocation7], %s810_s24  ;;  %s817_s10 = sshll.u32 %s1082_s15, 13 }
  0x5d   : > { %v263_v7 = vld [vmem:[#allocation5 + $0x38] sm:$0xff]  ;;  %v820_v8 = vpack.c.bf16 %v258_v5, %v256_v3  ;;  %v260_v10 = vld [vmem:[#allocation5 + $0x20] sm:$0xff]  ;;  %v262_v11 = vld [vmem:[#allocation5 + $0x30] sm:$0xff]  ;;  %s702_s11 = sshll.u32 %s1364_s9, 4  ;;  %s1491_s26 = scalar_lea.hbm %s1549_s3, %s817_s10  ;;  %s1493_s11 = int_to_ptr.vmem [resolvable:$true] %s702_s11 }
  0x5e   : > { %v822_v9 = vpack.c.bf16 %v263_v7, %v261_v6  ;;  %v265_v12 = vld [vmem:[#allocation5 + $0x48] sm:$0xff]  ;;  %819 = vmatprep.subr.bf16.mxu0 %v818_v4  ;;  %850 = vmatprep.subr.bf16.mxu1 %v818_v4  ;;  %v267_v13 = vld [vmem:[#allocation5 + $0x58] sm:$0xff]  ;;  %v824_v14 = vpack.c.bf16 %v262_v11, %v260_v10  ;;  %v264_v16 = vld [vmem:[#allocation5 + $0x40] sm:$0xff]  ;;  %s686_s7 = scalar_lea.sflag [#allocation4], %s1274_s27  ;;  %s1004_s8 = scalar_lea.vmem %s1493_s11, 8192 }
  0x5f   : > { %821 = vmatpush1.bf16.msra.mxu0 %v820_v8  ;;  %858 = vmatpush1.bf16.msra.mxu1 %v820_v8  ;;  %v826_v15 = vpack.c.bf16 %v267_v13, %v265_v12  ;;  %v266_v17 = vld [vmem:[#allocation5 + $0x50] sm:$0xff]  ;;  %v269_v18 = vld [vmem:[#allocation5 + $0x68] sm:$0xff]  ;;  %v271_v19 = vld [vmem:[#allocation5 + $0x78] sm:$0xff]  ;;  %p1005_p4 = scmp.ne.s32.totalorder %s1493_s11, %s1004_s8  ;;  %s1099_s21 = smov [#allocation7]  }
  0x60   : > { %823 = vmatprep.subr.bf16.mxu0 %v822_v9  ;;  %851 = vmatprep.subr.bf16.mxu1 %v822_v9  ;;  %v828_v20 = vpack.c.bf16 %v266_v17, %v264_v16  ;;  %v830_v21 = vpack.c.bf16 %v271_v19, %v269_v18  ;;  %v268_v22 = vld [vmem:[#allocation5 + $0x60] sm:$0xff]  ;;  %v270_v23 = vld [vmem:[#allocation5 + $0x70] sm:$0xff]  ;;  %v273_v24 = vld [vmem:[#allocation5 + $0x88] sm:$0xff]  ;;  %v290_v18 = vlaneseq  ;;  %s1008_s19 = sshll.u32 %s1099_s21, 4  ;;  %s1009_s19 = int_to_ptr.vmem [resolvable:$false] %s1008_s19 }
  0x61   : > { %v275_v25 = vld [vmem:[#allocation5 + $0x98] sm:$0xff]  ;;  %v832_v26 = vpack.c.bf16 %v270_v23, %v268_v22  ;;  %v272_v28 = vld [vmem:[#allocation5 + $0x80] sm:$0xff]  ;;  %v274_v29 = vld [vmem:[#allocation5 + $0x90] sm:$0xff]  ;;  %p1006_p6 = pnand %p1005_p4, %p1218_p10  ;;  %s1010_s25 = scalar_lea.vmem %s1009_s19, 16384 }
  0x62   : > { %v834_v27 = vpack.c.bf16 %v275_v25, %v273_v24  ;;  %v277_v30 = vld [vmem:[#allocation5 + $0xa8] sm:$0xff]  ;;  %v279_v31 = vld [vmem:[#allocation5 + $0xb8] sm:$0xff]  ;;  %v836_v32 = vpack.c.bf16 %v274_v29, %v272_v28  ;;  %v276_v34 = vld [vmem:[#allocation5 + $0xa0] sm:$0xff]  ;;  %v291_v19 = vshrl.u32 %v290_v18, 7  ;;  %p1011_p12 = scmp.lt.s32.totalorder %s1493_s11, %s1009_s19  ;;  %p1012_p11 = scmp.lt.s32.totalorder %s1010_s25, %s1004_s8 }
  0x63   : > { %825 = vmatpush1.bf16.msra.mxu0 %v824_v14  ;;  %859 = vmatpush1.bf16.msra.mxu1 %v824_v14  ;;  %v838_v33 = vpack.c.bf16 %v279_v31, %v277_v30  ;;  %v278_v35 = vld [vmem:[#allocation5 + $0xb0] sm:$0xff]  ;;  %v281_v36 = vld [vmem:[#allocation5 + $0xc8] sm:$0xff]  ;;  %v283_v37 = vld [vmem:[#allocation5 + $0xd8] sm:$0xff]  ;;  %p1007_p8 = pneg %p1006_p6 }
  0x64   : > { %827 = vmatprep.subr.bf16.mxu0 %v826_v15  ;;  %852 = vmatprep.subr.bf16.mxu1 %v826_v15  ;;  %v840_v38 = vpack.c.bf16 %v278_v35, %v276_v34  ;;  %v842_v39 = vpack.c.bf16 %v283_v37, %v281_v36  ;;  %v280_v40 = vld [vmem:[#allocation5 + $0xc0] sm:$0xff]  ;;  %v282_v41 = vld [vmem:[#allocation5 + $0xd0] sm:$0xff]  ;;  %v285_v42 = vld [vmem:[#allocation5 + $0xe8] sm:$0xff]  ;;  %v296_v22 = vsub.s32 1, %v291_v19  ;;  %p1013_p0 = por %p1012_p11, %p1011_p12 }
  0x65   : > { %v287_v43 = vld [vmem:[#allocation5 + $0xf8] sm:$0xff]  ;;  %v844_v44 = vpack.c.bf16 %v282_v41, %v280_v40  ;;  %v284_v46 = vld [vmem:[#allocation5 + $0xe0] sm:$0xff]  ;;  %v286_v47 = vld [vmem:[#allocation5 + $0xf0] sm:$0xff] }
  0x66   : > { %v846_v45 = vpack.c.bf16 %v287_v43, %v285_v42  ;;  %v848_v48 = vpack.c.bf16 %v286_v47, %v284_v46  ;;  %v224_v49 = vld [vmem:[%s1278_s6] sm:$0xff]  ;;  %v225_v51 = vld [vmem:[%s1278_s6 + $0x8] sm:$0xff]  ;;  %v226_v53 = vld [vmem:[%s1278_s6 + $0x10] sm:$0xff]  ;;  %p1014_p5 = pnand %p1013_p0, %p1007_p8 }
  0x67   : > { %829 = vmatpush1.bf16.msra.mxu0 %v828_v20  ;;  %860 = vmatpush1.bf16.msra.mxu1 %v828_v20  ;;  %v240_v50 = vld [vmem:[%s1278_s6 + $0x80] sm:$0xff]  ;;  %v241_v52 = vld [vmem:[%s1278_s6 + $0x88] sm:$0xff]  ;;  %v242_v54 = vld [vmem:[%s1278_s6 + $0x90] sm:$0xff]  ;;  %v292_v20 = vsub.s32 0, %v291_v19 }
  0x68   : > { %831 = vmatprep.subr.bf16.mxu0 %v830_v21  ;;  %853 = vmatprep.subr.bf16.mxu1 %v830_v21  ;;  %v227_v55 = vld [vmem:[%s1278_s6 + $0x18] sm:$0xff]  ;;  %v228_v57 = vld [vmem:[%s1278_s6 + $0x20] sm:$0xff]  ;;  %v229_v59 = vld [vmem:[%s1278_s6 + $0x28] sm:$0xff] }
  0x69   : > { %v243_v56 = vld [vmem:[%s1278_s6 + $0x98] sm:$0xff]  ;;  %v244_v58 = vld [vmem:[%s1278_s6 + $0xa0] sm:$0xff]  ;;  %v245_v60 = vld [vmem:[%s1278_s6 + $0xa8] sm:$0xff] }
  0x6a   : > { %v230_v61 = vld [vmem:[%s1278_s6 + $0x30] sm:$0xff]  ;;  %v231_v63 = vld [vmem:[%s1278_s6 + $0x38] sm:$0xff]  ;;  %v232_v2 = vld [vmem:[%s1278_s6 + $0x40] sm:$0xff] }
  0x6b   : > { %833 = vmatpush1.bf16.msra.mxu0 %v832_v26  ;;  %861 = vmatpush1.bf16.msra.mxu1 %v832_v26  ;;  %v246_v62 = vld [vmem:[%s1278_s6 + $0xb0] sm:$0xff]  ;;  %v247_v1 = vld [vmem:[%s1278_s6 + $0xb8] sm:$0xff]  ;;  %v248_v3 = vld [vmem:[%s1278_s6 + $0xc0] sm:$0xff] }
  0x6c   : > { %835 = vmatprep.subr.bf16.mxu0 %v834_v27  ;;  %854 = vmatprep.subr.bf16.mxu1 %v834_v27  ;;  %v233_v4 = vld [vmem:[%s1278_s6 + $0x48] sm:$0xff]  ;;  %v234_v6 = vld [vmem:[%s1278_s6 + $0x50] sm:$0xff]  ;;  %v235_v8 = vld [vmem:[%s1278_s6 + $0x58] sm:$0xff] }
  0x6d   : > { %v249_v5 = vld [vmem:[%s1278_s6 + $0xc8] sm:$0xff]  ;;  %v250_v7 = vld [vmem:[%s1278_s6 + $0xd0] sm:$0xff]  ;;  %v251_v9 = vld [vmem:[%s1278_s6 + $0xd8] sm:$0xff] }
  0x6e   : > { %v236_v10 = vld [vmem:[%s1278_s6 + $0x60] sm:$0xff]  ;;  %v237_v12 = vld [vmem:[%s1278_s6 + $0x68] sm:$0xff]  ;;  %v238_v14 = vld [vmem:[%s1278_s6 + $0x70] sm:$0xff] }
  0x6f   : > { %837 = vmatpush1.bf16.msra.mxu0 %v836_v32  ;;  %862 = vmatpush1.bf16.msra.mxu1 %v836_v32  ;;  %v252_v11 = vld [vmem:[%s1278_s6 + $0xe0] sm:$0xff]  ;;  %v253_v13 = vld [vmem:[%s1278_s6 + $0xe8] sm:$0xff]  ;;  %v254_v15 = vld [vmem:[%s1278_s6 + $0xf0] sm:$0xff] }
  0x70   : > { %839 = vmatprep.subr.bf16.mxu0 %v838_v33  ;;  %855 = vmatprep.subr.bf16.mxu1 %v838_v33  ;;  %v239_v16 = vld [vmem:[%s1278_s6 + $0x78] sm:$0xff]  ;;  %v288_v21 = vld [vmem:[%s1548_s2] sm:$0x3] }
  0x71   : > { %v255_v17 = vld [vmem:[%s1278_s6 + $0xf8] sm:$0xff]  ;;  %v1355_v23 = vrot.slane %v288_v21, %v292_v20  ;;  %v1357_v24 = vrot.slane %v288_v21, %v296_v22 }
  0x73   : > { %841 = vmatpush1.bf16.msra.mxu0 %v840_v38  ;;  %863 = vmatpush1.bf16.msra.mxu1 %v840_v38 }
  0x74   : > { %843 = vmatprep.subr.bf16.mxu0 %v842_v39  ;;  %856 = vmatprep.subr.bf16.mxu1 %v842_v39 }
  0x77   : > { %845 = vmatpush1.bf16.msra.mxu0 %v844_v44  ;;  %864 = vmatpush1.bf16.msra.mxu1 %v844_v44 }
  0x78   : > { %847 = vmatprep.subr.bf16.mxu0 %v846_v45  ;;  %857 = vmatprep.subr.bf16.mxu1 %v846_v45 }
  0x7b   : > { %849 = vmatpush1.bf16.msra.mxu0 %v848_v48  ;;  %865 = vmatpush1.bf16.msra.mxu1 %v848_v48 }
  0x7e   : > { %365 = vmatmul.mubr.f32.vlgmr.msra.gmra.mrb[0].mxu0 %v224_v49  ;;  %461 = vmatmul.mubr.f32.vlgmr.msra.gmra.mrb[0].mxu1 %v240_v50 }
  0x7f   : > { %370 = vmatprep.mubr.f32.mxu0 %v1098_v0  ;;  %466 = vmatprep.mubr.f32.mxu1 %v1098_v0 }
  0x82   : > { %371 = vmatmul.mubr.f32.gmra.mrb[2].mxu0 %v225_v51  ;;  %467 = vmatmul.mubr.f32.gmra.mrb[2].mxu1 %v241_v52 }
  0x83   : > { %376 = vmatprep.mubr.f32.mxu0 %v1098_v0  ;;  %472 = vmatprep.mubr.f32.mxu1 %v1098_v0 }
  0x86   : > { %377 = vmatmul.mubr.f32.gmra.mrb[4].mxu0 %v226_v53  ;;  %473 = vmatmul.mubr.f32.gmra.mrb[4].mxu1 %v242_v54 }
  0x87   : > { %382 = vmatprep.mubr.f32.mxu0 %v1098_v0  ;;  %478 = vmatprep.mubr.f32.mxu1 %v1098_v0 }
  0x8a   : > { %383 = vmatmul.mubr.f32.gmra.mrb[6].mxu0 %v227_v55  ;;  %479 = vmatmul.mubr.f32.gmra.mrb[6].mxu1 %v243_v56 }
  0x8b   : > { %388 = vmatprep.mubr.f32.mxu0 %v1098_v0  ;;  %484 = vmatprep.mubr.f32.mxu1 %v1098_v0 }
  0x8e   : > { %389 = vmatmul.mubr.f32.gmra.mrb[8].mxu0 %v228_v57  ;;  %485 = vmatmul.mubr.f32.gmra.mrb[8].mxu1 %v244_v58 }
  0x8f   : > { %394 = vmatprep.mubr.f32.mxu0 %v1098_v0  ;;  %490 = vmatprep.mubr.f32.mxu1 %v1098_v0 }
  0x92   : > { %395 = vmatmul.mubr.f32.gmra.mrb[10].mxu0 %v229_v59  ;;  %491 = vmatmul.mubr.f32.gmra.mrb[10].mxu1 %v245_v60 }
  0x93   : > { %400 = vmatprep.mubr.f32.mxu0 %v1098_v0  ;;  %496 = vmatprep.mubr.f32.mxu1 %v1098_v0 }
  0x96   : > { %401 = vmatmul.mubr.f32.gmra.mrb[12].mxu0 %v230_v61  ;;  %497 = vmatmul.mubr.f32.gmra.mrb[12].mxu1 %v246_v62 }
  0x97   : > { %406 = vmatprep.mubr.f32.mxu0 %v1098_v0  ;;  %502 = vmatprep.mubr.f32.mxu1 %v1098_v0 }
  0x9a   : > { %407 = vmatmul.mubr.f32.gmra.mrb[14].mxu0 %v231_v63  ;;  %503 = vmatmul.mubr.f32.gmra.mrb[14].mxu1 %v247_v1 }
  0x9b   : > { %412 = vmatprep.mubr.f32.mxu0 %v1098_v0  ;;  %508 = vmatprep.mubr.f32.mxu1 %v1098_v0 }
  0x9e   : > { %413 = vmatmul.mubr.f32.gmra.mrb[16].mxu0 %v232_v2  ;;  %509 = vmatmul.mubr.f32.gmra.mrb[16].mxu1 %v248_v3 }
  0x9f   : > { %418 = vmatprep.mubr.f32.mxu0 %v1098_v0  ;;  %514 = vmatprep.mubr.f32.mxu1 %v1098_v0 }
  0xa2   : > { %419 = vmatmul.mubr.f32.gmra.mrb[18].mxu0 %v233_v4  ;;  %515 = vmatmul.mubr.f32.gmra.mrb[18].mxu1 %v249_v5 }
  0xa3   : > { %424 = vmatprep.mubr.f32.mxu0 %v1098_v0  ;;  %520 = vmatprep.mubr.f32.mxu1 %v1098_v0 }
  0xa6   : > { %425 = vmatmul.mubr.f32.gmra.mrb[20].mxu0 %v234_v6  ;;  %521 = vmatmul.mubr.f32.gmra.mrb[20].mxu1 %v250_v7 }
  0xa7   : > { %430 = vmatprep.mubr.f32.mxu0 %v1098_v0  ;;  %526 = vmatprep.mubr.f32.mxu1 %v1098_v0 }
  0xaa   : > { %431 = vmatmul.mubr.f32.gmra.mrb[22].mxu0 %v235_v8  ;;  %527 = vmatmul.mubr.f32.gmra.mrb[22].mxu1 %v251_v9 }
  0xab   : > { %436 = vmatprep.mubr.f32.mxu0 %v1098_v0  ;;  %532 = vmatprep.mubr.f32.mxu1 %v1098_v0 }
  0xae   : > { %437 = vmatmul.mubr.f32.gmra.mrb[24].mxu0 %v236_v10  ;;  %533 = vmatmul.mubr.f32.gmra.mrb[24].mxu1 %v252_v11 }
  0xaf   : > { %442 = vmatprep.mubr.f32.mxu0 %v1098_v0  ;;  %538 = vmatprep.mubr.f32.mxu1 %v1098_v0 }
  0xb2   : > { %443 = vmatmul.mubr.f32.gmra.mrb[26].mxu0 %v237_v12  ;;  %539 = vmatmul.mubr.f32.gmra.mrb[26].mxu1 %v253_v13 }
  0xb3   : > { %448 = vmatprep.mubr.f32.mxu0 %v1098_v0  ;;  %544 = vmatprep.mubr.f32.mxu1 %v1098_v0 }
  0xb6   : > { %449 = vmatmul.mubr.f32.gmra.mrb[28].mxu0 %v238_v14  ;;  %545 = vmatmul.mubr.f32.gmra.mrb[28].mxu1 %v254_v15 }
  0xb7   : > { %454 = vmatprep.mubr.f32.mxu0 %v1098_v0  ;;  %550 = vmatprep.mubr.f32.mxu1 %v1098_v0 }
  0xba   : > { %455 = vmatmul.mubr.f32.gmra.mrb[30].mxu0 %v239_v16  ;;  %551 = vmatmul.mubr.f32.gmra.mrb[30].mxu1 %v255_v17 }
 0x151   : > { %v366_v25 = vpop.f32.mrb[0].mxu0  ;;  %v462_v26 = vpop.f32.mrb[0].mxu1 }
 0x152   : > { %v367_v0 = vadd.f32 %v366_v25, %v1355_v23  ;;  %v463_v27 = vadd.f32 %v462_v26, %v1355_v23  ;;  %v368_v28 = vpop.f32.mrb[1].mxu0  ;;  %v464_v29 = vpop.f32.mrb[1].mxu1 }
 0x153   : > { %v369_v30 = vadd.f32 %v368_v28, %v1357_v24  ;;  %v465_v31 = vadd.f32 %v464_v29, %v1357_v24 }
 0x154   : > { %v557_v32 = vmul.f32 16.0, %v367_v0  ;;  %v589_v33 = vmul.f32 16.0, %v463_v27 }
 0x155   : > { %v558_v34 = vmul.f32 16.0, %v369_v30  ;;  %v590_v35 = vmul.f32 16.0, %v465_v31  ;;  %v372_v36 = vpop.f32.mrb[2].mxu0  ;;  %v468_v37 = vpop.f32.mrb[2].mxu1 }
 0x156   : > { %621 = vst [vmem:[%s1364_s9] sm:$0xff] %v557_v32  ;;  %653 = vst [vmem:[%s1364_s9 + $0x100] sm:$0xff] %v589_v33  ;;  %v373_v38 = vadd.f32 %v372_v36, %v1355_v23  ;;  %v469_v39 = vadd.f32 %v468_v37, %v1355_v23  ;;  %v374_v40 = vpop.f32.mrb[3].mxu0  ;;  %v470_v41 = vpop.f32.mrb[3].mxu1 }
 0x157   : > { %622 = vst [vmem:[%s1364_s9 + $0x8] sm:$0xff] %v558_v34  ;;  %654 = vst [vmem:[%s1364_s9 + $0x108] sm:$0xff] %v590_v35  ;;  %v375_v42 = vadd.f32 %v374_v40, %v1357_v24  ;;  %v471_v43 = vadd.f32 %v470_v41, %v1357_v24 }
 0x158   : > { %v559_v44 = vmul.f32 16.0, %v373_v38  ;;  %v591_v45 = vmul.f32 16.0, %v469_v39 }
 0x159   : > { %v560_v46 = vmul.f32 16.0, %v375_v42  ;;  %v592_v47 = vmul.f32 16.0, %v471_v43  ;;  %v378_v48 = vpop.f32.mrb[4].mxu0  ;;  %v474_v49 = vpop.f32.mrb[4].mxu1 }
 0x15a   : > { %623 = vst [vmem:[%s1364_s9 + $0x10] sm:$0xff] %v559_v44  ;;  %655 = vst [vmem:[%s1364_s9 + $0x110] sm:$0xff] %v591_v45  ;;  %v379_v50 = vadd.f32 %v378_v48, %v1355_v23  ;;  %v475_v51 = vadd.f32 %v474_v49, %v1355_v23  ;;  %v380_v52 = vpop.f32.mrb[5].mxu0  ;;  %v476_v53 = vpop.f32.mrb[5].mxu1 }
 0x15b   : > { %624 = vst [vmem:[%s1364_s9 + $0x18] sm:$0xff] %v560_v46  ;;  %656 = vst [vmem:[%s1364_s9 + $0x118] sm:$0xff] %v592_v47  ;;  %v381_v54 = vadd.f32 %v380_v52, %v1357_v24  ;;  %v477_v55 = vadd.f32 %v476_v53, %v1357_v24 }
 0x15c   : > { %v561_v56 = vmul.f32 16.0, %v379_v50  ;;  %v593_v57 = vmul.f32 16.0, %v475_v51 }
 0x15d   : > { %v562_v58 = vmul.f32 16.0, %v381_v54  ;;  %v594_v59 = vmul.f32 16.0, %v477_v55  ;;  %v384_v60 = vpop.f32.mrb[6].mxu0  ;;  %v480_v61 = vpop.f32.mrb[6].mxu1 }
 0x15e   : > { %625 = vst [vmem:[%s1364_s9 + $0x20] sm:$0xff] %v561_v56  ;;  %657 = vst [vmem:[%s1364_s9 + $0x120] sm:$0xff] %v593_v57  ;;  %v385_v62 = vadd.f32 %v384_v60, %v1355_v23  ;;  %v481_v63 = vadd.f32 %v480_v61, %v1355_v23  ;;  %v386_v1 = vpop.f32.mrb[7].mxu0  ;;  %v482_v2 = vpop.f32.mrb[7].mxu1 }
 0x15f   : > { %626 = vst [vmem:[%s1364_s9 + $0x28] sm:$0xff] %v562_v58  ;;  %658 = vst [vmem:[%s1364_s9 + $0x128] sm:$0xff] %v594_v59  ;;  %v387_v3 = vadd.f32 %v386_v1, %v1357_v24  ;;  %v483_v4 = vadd.f32 %v482_v2, %v1357_v24 }
 0x160   : > { %v563_v5 = vmul.f32 16.0, %v385_v62  ;;  %v595_v6 = vmul.f32 16.0, %v481_v63 }
 0x161   : > { %v564_v7 = vmul.f32 16.0, %v387_v3  ;;  %v596_v8 = vmul.f32 16.0, %v483_v4  ;;  %v390_v9 = vpop.f32.mrb[8].mxu0  ;;  %v486_v10 = vpop.f32.mrb[8].mxu1 }
 0x162   : > { %627 = vst [vmem:[%s1364_s9 + $0x30] sm:$0xff] %v563_v5  ;;  %659 = vst [vmem:[%s1364_s9 + $0x130] sm:$0xff] %v595_v6  ;;  %v391_v11 = vadd.f32 %v390_v9, %v1355_v23  ;;  %v487_v12 = vadd.f32 %v486_v10, %v1355_v23  ;;  %v392_v13 = vpop.f32.mrb[9].mxu0  ;;  %v488_v14 = vpop.f32.mrb[9].mxu1 }
 0x163   : > { %628 = vst [vmem:[%s1364_s9 + $0x38] sm:$0xff] %v564_v7  ;;  %660 = vst [vmem:[%s1364_s9 + $0x138] sm:$0xff] %v596_v8  ;;  %v393_v15 = vadd.f32 %v392_v13, %v1357_v24  ;;  %v489_v16 = vadd.f32 %v488_v14, %v1357_v24 }
 0x164   : > { %v565_v17 = vmul.f32 16.0, %v391_v11  ;;  %v597_v18 = vmul.f32 16.0, %v487_v12 }
 0x165   : > { %v566_v19 = vmul.f32 16.0, %v393_v15  ;;  %v598_v20 = vmul.f32 16.0, %v489_v16  ;;  %v396_v21 = vpop.f32.mrb[10].mxu0  ;;  %v492_v22 = vpop.f32.mrb[10].mxu1 }
 0x166   : > { %629 = vst [vmem:[%s1364_s9 + $0x40] sm:$0xff] %v565_v17  ;;  %661 = vst [vmem:[%s1364_s9 + $0x140] sm:$0xff] %v597_v18  ;;  %v397_v25 = vadd.f32 %v396_v21, %v1355_v23  ;;  %v493_v26 = vadd.f32 %v492_v22, %v1355_v23  ;;  %v398_v0 = vpop.f32.mrb[11].mxu0  ;;  %v494_v27 = vpop.f32.mrb[11].mxu1 }
 0x167   : > { %630 = vst [vmem:[%s1364_s9 + $0x48] sm:$0xff] %v566_v19  ;;  %662 = vst [vmem:[%s1364_s9 + $0x148] sm:$0xff] %v598_v20  ;;  %v399_v28 = vadd.f32 %v398_v0, %v1357_v24  ;;  %v495_v29 = vadd.f32 %v494_v27, %v1357_v24 }
 0x168   : > { %v567_v30 = vmul.f32 16.0, %v397_v25  ;;  %v599_v31 = vmul.f32 16.0, %v493_v26 }
 0x169   : > { %v568_v32 = vmul.f32 16.0, %v399_v28  ;;  %v600_v33 = vmul.f32 16.0, %v495_v29  ;;  %v402_v34 = vpop.f32.mrb[12].mxu0  ;;  %v498_v35 = vpop.f32.mrb[12].mxu1 }
 0x16a   : > { %631 = vst [vmem:[%s1364_s9 + $0x50] sm:$0xff] %v567_v30  ;;  %663 = vst [vmem:[%s1364_s9 + $0x150] sm:$0xff] %v599_v31  ;;  %v403_v36 = vadd.f32 %v402_v34, %v1355_v23  ;;  %v499_v37 = vadd.f32 %v498_v35, %v1355_v23  ;;  %v404_v38 = vpop.f32.mrb[13].mxu0  ;;  %v500_v39 = vpop.f32.mrb[13].mxu1 }
 0x16b   : > { %632 = vst [vmem:[%s1364_s9 + $0x58] sm:$0xff] %v568_v32  ;;  %664 = vst [vmem:[%s1364_s9 + $0x158] sm:$0xff] %v600_v33  ;;  %v405_v40 = vadd.f32 %v404_v38, %v1357_v24  ;;  %v501_v41 = vadd.f32 %v500_v39, %v1357_v24 }
 0x16c   : > { %v569_v42 = vmul.f32 16.0, %v403_v36  ;;  %v601_v43 = vmul.f32 16.0, %v499_v37 }
 0x16d   : > { %v570_v44 = vmul.f32 16.0, %v405_v40  ;;  %v602_v45 = vmul.f32 16.0, %v501_v41  ;;  %v408_v46 = vpop.f32.mrb[14].mxu0  ;;  %v504_v47 = vpop.f32.mrb[14].mxu1 }
 0x16e   : > { %633 = vst [vmem:[%s1364_s9 + $0x60] sm:$0xff] %v569_v42  ;;  %665 = vst [vmem:[%s1364_s9 + $0x160] sm:$0xff] %v601_v43  ;;  %v409_v48 = vadd.f32 %v408_v46, %v1355_v23  ;;  %v505_v49 = vadd.f32 %v504_v47, %v1355_v23  ;;  %v410_v50 = vpop.f32.mrb[15].mxu0  ;;  %v506_v51 = vpop.f32.mrb[15].mxu1 }
 0x16f   : > { %634 = vst [vmem:[%s1364_s9 + $0x68] sm:$0xff] %v570_v44  ;;  %666 = vst [vmem:[%s1364_s9 + $0x168] sm:$0xff] %v602_v45  ;;  %v411_v52 = vadd.f32 %v410_v50, %v1357_v24  ;;  %v507_v53 = vadd.f32 %v506_v51, %v1357_v24 }
 0x170   : > { %v571_v54 = vmul.f32 16.0, %v409_v48  ;;  %v603_v55 = vmul.f32 16.0, %v505_v49 }
 0x171   : > { %v572_v56 = vmul.f32 16.0, %v411_v52  ;;  %v604_v57 = vmul.f32 16.0, %v507_v53  ;;  %v414_v58 = vpop.f32.mrb[16].mxu0  ;;  %v510_v59 = vpop.f32.mrb[16].mxu1 }
 0x172   : > { %635 = vst [vmem:[%s1364_s9 + $0x70] sm:$0xff] %v571_v54  ;;  %667 = vst [vmem:[%s1364_s9 + $0x170] sm:$0xff] %v603_v55  ;;  %v415_v60 = vadd.f32 %v414_v58, %v1355_v23  ;;  %v511_v61 = vadd.f32 %v510_v59, %v1355_v23  ;;  %v416_v62 = vpop.f32.mrb[17].mxu0  ;;  %v512_v63 = vpop.f32.mrb[17].mxu1 }
 0x173   : > { %636 = vst [vmem:[%s1364_s9 + $0x78] sm:$0xff] %v572_v56  ;;  %668 = vst [vmem:[%s1364_s9 + $0x178] sm:$0xff] %v604_v57  ;;  %v417_v1 = vadd.f32 %v416_v62, %v1357_v24  ;;  %v513_v2 = vadd.f32 %v512_v63, %v1357_v24 }
 0x174   : > { %v573_v3 = vmul.f32 16.0, %v415_v60  ;;  %v605_v4 = vmul.f32 16.0, %v511_v61 }
 0x175   : > { %v574_v5 = vmul.f32 16.0, %v417_v1  ;;  %v606_v6 = vmul.f32 16.0, %v513_v2  ;;  %v420_v7 = vpop.f32.mrb[18].mxu0  ;;  %v516_v8 = vpop.f32.mrb[18].mxu1 }
 0x176   : > { %637 = vst [vmem:[%s1364_s9 + $0x80] sm:$0xff] %v573_v3  ;;  %669 = vst [vmem:[%s1364_s9 + $0x180] sm:$0xff] %v605_v4  ;;  %v421_v9 = vadd.f32 %v420_v7, %v1355_v23  ;;  %v517_v10 = vadd.f32 %v516_v8, %v1355_v23  ;;  %v422_v11 = vpop.f32.mrb[19].mxu0  ;;  %v518_v12 = vpop.f32.mrb[19].mxu1 }
 0x177   : > { %638 = vst [vmem:[%s1364_s9 + $0x88] sm:$0xff] %v574_v5  ;;  %670 = vst [vmem:[%s1364_s9 + $0x188] sm:$0xff] %v606_v6  ;;  %v423_v13 = vadd.f32 %v422_v11, %v1357_v24  ;;  %v519_v14 = vadd.f32 %v518_v12, %v1357_v24 }
 0x178   : > { %v575_v15 = vmul.f32 16.0, %v421_v9  ;;  %v607_v16 = vmul.f32 16.0, %v517_v10 }
 0x179   : > { %v576_v17 = vmul.f32 16.0, %v423_v13  ;;  %v608_v18 = vmul.f32 16.0, %v519_v14  ;;  %v426_v19 = vpop.f32.mrb[20].mxu0  ;;  %v522_v20 = vpop.f32.mrb[20].mxu1 }
 0x17a   : > { %639 = vst [vmem:[%s1364_s9 + $0x90] sm:$0xff] %v575_v15  ;;  %671 = vst [vmem:[%s1364_s9 + $0x190] sm:$0xff] %v607_v16  ;;  %v427_v21 = vadd.f32 %v426_v19, %v1355_v23  ;;  %v523_v22 = vadd.f32 %v522_v20, %v1355_v23  ;;  %v428_v25 = vpop.f32.mrb[21].mxu0  ;;  %v524_v26 = vpop.f32.mrb[21].mxu1 }
 0x17b   : > { %640 = vst [vmem:[%s1364_s9 + $0x98] sm:$0xff] %v576_v17  ;;  %672 = vst [vmem:[%s1364_s9 + $0x198] sm:$0xff] %v608_v18  ;;  %v429_v0 = vadd.f32 %v428_v25, %v1357_v24  ;;  %v525_v27 = vadd.f32 %v524_v26, %v1357_v24 }
 0x17c   : > { %v577_v28 = vmul.f32 16.0, %v427_v21  ;;  %v609_v29 = vmul.f32 16.0, %v523_v22 }
 0x17d   : > { %v578_v30 = vmul.f32 16.0, %v429_v0  ;;  %v610_v31 = vmul.f32 16.0, %v525_v27  ;;  %v432_v32 = vpop.f32.mrb[22].mxu0  ;;  %v528_v33 = vpop.f32.mrb[22].mxu1 }
 0x17e   : > { %641 = vst [vmem:[%s1364_s9 + $0xa0] sm:$0xff] %v577_v28  ;;  %673 = vst [vmem:[%s1364_s9 + $0x1a0] sm:$0xff] %v609_v29  ;;  %v433_v34 = vadd.f32 %v432_v32, %v1355_v23  ;;  %v529_v35 = vadd.f32 %v528_v33, %v1355_v23  ;;  %v434_v36 = vpop.f32.mrb[23].mxu0  ;;  %v530_v37 = vpop.f32.mrb[23].mxu1 }
 0x17f   : > { %642 = vst [vmem:[%s1364_s9 + $0xa8] sm:$0xff] %v578_v30  ;;  %674 = vst [vmem:[%s1364_s9 + $0x1a8] sm:$0xff] %v610_v31  ;;  %v435_v38 = vadd.f32 %v434_v36, %v1357_v24  ;;  %v531_v39 = vadd.f32 %v530_v37, %v1357_v24 }
 0x180   : > { %v579_v40 = vmul.f32 16.0, %v433_v34  ;;  %v611_v41 = vmul.f32 16.0, %v529_v35 }
 0x181   : > { %v580_v42 = vmul.f32 16.0, %v435_v38  ;;  %v612_v43 = vmul.f32 16.0, %v531_v39  ;;  %v438_v44 = vpop.f32.mrb[24].mxu0  ;;  %v534_v45 = vpop.f32.mrb[24].mxu1 }
 0x182   : > { %643 = vst [vmem:[%s1364_s9 + $0xb0] sm:$0xff] %v579_v40  ;;  %675 = vst [vmem:[%s1364_s9 + $0x1b0] sm:$0xff] %v611_v41  ;;  %v439_v46 = vadd.f32 %v438_v44, %v1355_v23  ;;  %v535_v47 = vadd.f32 %v534_v45, %v1355_v23  ;;  %v440_v48 = vpop.f32.mrb[25].mxu0  ;;  %v536_v49 = vpop.f32.mrb[25].mxu1 }
 0x183   : > { %644 = vst [vmem:[%s1364_s9 + $0xb8] sm:$0xff] %v580_v42  ;;  %676 = vst [vmem:[%s1364_s9 + $0x1b8] sm:$0xff] %v612_v43  ;;  %v441_v50 = vadd.f32 %v440_v48, %v1357_v24  ;;  %v537_v51 = vadd.f32 %v536_v49, %v1357_v24 }
 0x184   : > { %v581_v52 = vmul.f32 16.0, %v439_v46  ;;  %v613_v53 = vmul.f32 16.0, %v535_v47 }
 0x185   : > { %v582_v54 = vmul.f32 16.0, %v441_v50  ;;  %v614_v55 = vmul.f32 16.0, %v537_v51  ;;  %v444_v56 = vpop.f32.mrb[26].mxu0  ;;  %v540_v57 = vpop.f32.mrb[26].mxu1 }
 0x186   : > { %645 = vst [vmem:[%s1364_s9 + $0xc0] sm:$0xff] %v581_v52  ;;  %677 = vst [vmem:[%s1364_s9 + $0x1c0] sm:$0xff] %v613_v53  ;;  %v445_v58 = vadd.f32 %v444_v56, %v1355_v23  ;;  %v541_v59 = vadd.f32 %v540_v57, %v1355_v23  ;;  %v446_v60 = vpop.f32.mrb[27].mxu0  ;;  %v542_v61 = vpop.f32.mrb[27].mxu1 }
 0x187   : > { %646 = vst [vmem:[%s1364_s9 + $0xc8] sm:$0xff] %v582_v54  ;;  %678 = vst [vmem:[%s1364_s9 + $0x1c8] sm:$0xff] %v614_v55  ;;  %v447_v62 = vadd.f32 %v446_v60, %v1357_v24  ;;  %v543_v63 = vadd.f32 %v542_v61, %v1357_v24 }
 0x188   : > { %v583_v1 = vmul.f32 16.0, %v445_v58  ;;  %v615_v2 = vmul.f32 16.0, %v541_v59 }
 0x189   : > { %v584_v3 = vmul.f32 16.0, %v447_v62  ;;  %v616_v4 = vmul.f32 16.0, %v543_v63  ;;  %v450_v5 = vpop.f32.mrb[28].mxu0  ;;  %v546_v6 = vpop.f32.mrb[28].mxu1 }
 0x18a   : > { %647 = vst [vmem:[%s1364_s9 + $0xd0] sm:$0xff] %v583_v1  ;;  %679 = vst [vmem:[%s1364_s9 + $0x1d0] sm:$0xff] %v615_v2  ;;  %v451_v7 = vadd.f32 %v450_v5, %v1355_v23  ;;  %v547_v8 = vadd.f32 %v546_v6, %v1355_v23  ;;  %v452_v9 = vpop.f32.mrb[29].mxu0  ;;  %v548_v10 = vpop.f32.mrb[29].mxu1 }
 0x18b   : > { %648 = vst [vmem:[%s1364_s9 + $0xd8] sm:$0xff] %v584_v3  ;;  %680 = vst [vmem:[%s1364_s9 + $0x1d8] sm:$0xff] %v616_v4  ;;  %v453_v11 = vadd.f32 %v452_v9, %v1357_v24  ;;  %v549_v12 = vadd.f32 %v548_v10, %v1357_v24 }
 0x18c   : > { %v585_v13 = vmul.f32 16.0, %v451_v7  ;;  %v617_v14 = vmul.f32 16.0, %v547_v8 }
 0x18d   : > { %v586_v15 = vmul.f32 16.0, %v453_v11  ;;  %v618_v16 = vmul.f32 16.0, %v549_v12  ;;  %v456_v17 = vpop.f32.mrb[30].mxu0  ;;  %v552_v18 = vpop.f32.mrb[30].mxu1 }
 0x18e   : > { %649 = vst [vmem:[%s1364_s9 + $0xe0] sm:$0xff] %v585_v13  ;;  %681 = vst [vmem:[%s1364_s9 + $0x1e0] sm:$0xff] %v617_v14  ;;  %v457_v19 = vadd.f32 %v456_v17, %v1355_v23  ;;  %v553_v20 = vadd.f32 %v552_v18, %v1355_v23  ;;  %v458_v21 = vpop.f32.mrb[31].mxu0  ;;  %v554_v22 = vpop.f32.mrb[31].mxu1 }
 0x18f   : > { %650 = vst [vmem:[%s1364_s9 + $0xe8] sm:$0xff] %v586_v15  ;;  %682 = vst [vmem:[%s1364_s9 + $0x1e8] sm:$0xff] %v618_v16  ;;  %v459_v25 = vadd.f32 %v458_v21, %v1357_v24  ;;  %v555_v26 = vadd.f32 %v554_v22, %v1357_v24 }
 0x190   : > { %v587_v0 = vmul.f32 16.0, %v457_v19  ;;  %v619_v27 = vmul.f32 16.0, %v553_v20 }
 0x191   : > { %v588_v23 = vmul.f32 16.0, %v459_v25  ;;  %v620_v28 = vmul.f32 16.0, %v555_v26 }
 0x192   : > { %651 = vst [vmem:[%s1364_s9 + $0xf0] sm:$0xff] %v587_v0  ;;  %683 = vst [vmem:[%s1364_s9 + $0x1f0] sm:$0xff] %v619_v27 }
 0x193   : > { %652 = vst [vmem:[%s1364_s9 + $0xf8] sm:$0xff] %v588_v23  ;;  %684 = vst [vmem:[%s1364_s9 + $0x1f8] sm:$0xff] %v620_v28 }
 0x194   : > { %1017 = shalt.err (!%p1014_p5)
}
 0x195   : > { %s1018_s29 = scalar_lea.hbm %s1491_s26, 8192  ;;  %s1022_s20 = scalar_lea.hbm %s1549_s3, 16384 }
 0x196   : > { %p1019_p9 = scmp.ne.s32.totalorder %s1491_s26, %s1018_s29  ;;  %p1023_p3 = scmp.lt.u32.totalorder %s1491_s26, %s1549_s3 }
 0x197   : > { %p1024_p7 = scmp.lt.u32.totalorder %s1022_s20, %s1018_s29  ;;  %p1026_p4 = scmp.lt.u32.totalorder %s1018_s29, %s1491_s26 }
 0x198   : > { %p1020_p1 = pnand %p1019_p9, %p1218_p10 }
 0x199   : > { %p1025_p13 = por %p1024_p7, %p1023_p3 }
 0x19a   : > { %p1021_p2 = pneg %p1020_p1 }
 0x19b   : > { %p1027_p6 = por %p1026_p4, %p1025_p13 }
 0x19d   : > { %p1028_p8 = pnand %p1027_p6, %p1021_p2 }
 0x19f   : > { %1031 = shalt.err (!%p1028_p8)
}
 0x1a0   : > { %s1100_s9 = smov 256   ;;  %s1101_s10 = smov 16  }
 0x1a1   : > { %872 = dma.vmem_to_hbm [thread:$0]  (%p1218_p10), %s1493_s11, 8192, %s1491_s26, %s686_s7, %s1100_s9, %s1100_s9, %s1101_s10  }
 0x1a2 PF: > { %s717_s15 = sand.u32 1, %s1070_s12   ;;  %p1567_p12 = scmp.ne.s32.totalorder %s1557_s23, 0 }
 0x1a3   : > { %p1568_p11 = scmp.ge.s32.totalorder %s1090_s17, 2  ;;  %s718_s18 = scalar_lea.sflag [#allocation4], %s717_s15 }
 0x1a5   : > { %p883_p0 = pnand %p1568_p11, %p1567_p12 }
 0x1a7   : > { %1065 = dma.done.wait (!%p883_p0), %s718_s18, 8192  }
 0x1a8   : > { %1067 = vsyncadd (!%p883_p0), %s718_s18, 4294959104  ;;  %s20_s17 = sadd.s32 1, %s1090_s17   ;;  %s1569_s12 = smov %s1074_s13 }
 0x1a9   : > { %p17_p5 = scmp.ge.s32.totalorder %s20_s17, 4   ;;  %s1570_s13 = smov %s1078_s14 }
 0x1aa   : > { %s1571_s14 = smov %s1227_s5  ;;  %s1572_s15 = smov %s1086_s16 }
 0x1ab   : > { %s1573_s16 = smov %s1575_s28  ;;  %19 = sbr.rel (!%p17_p5) target bundleno = 7 (0x7), region = 81 }
 0x1b2   :  { %723 = vsyncpa [#allocation3], 1 }
 0x1b3   :  { %725 = vsyncpa [#allocation3 + $0x1], 1 }
 0x1b4   :  { %726 = vsyncpa [#allocation6], 1 }
 0x1b5   :  { %727 = vsyncpa [#allocation4], 1 }
 0x1b6   :  { %729 = vsyncpa [#allocation4 + $0x1], 1 }

</bundles_post_ra>
